<compile_context>
chip_gen: v5e
topology: v5e:2x2
jax: 0.10.0
libtpu: 0.0.40
codegen_flags: <defaults>
</compile_context>

<pallas_src>
import math

import jax
import jax.numpy as jnp
from jax.experimental import pallas as pl
from jax.experimental.pallas import tpu as pltpu


# --------------------------------------------------------------------------- #
# Kernel
# --------------------------------------------------------------------------- #
def _ssn_ce_kernel(x_ref, t_ref, o_ref):
    """Accumulate lane-partial sums of log p(target | logits).

    x_ref: (TN, C, TL)  logits tile (input dtype; bf16 stays bf16 for VPU work)
    t_ref: (TB, 1, TL)  int8/int32 target classes; values < 0 (ignore labels and
                        ragged-lane padding) contribute nothing.  TB == TN, or
                        TB == 1 when batch == 1 (broadcast in-kernel).
    o_ref: (TN, 1, TL)  f32 lane-partial log-prob sums, resident across the lane
                        (reduction) grid axis.
    """
    l = pl.program_id(1)

    @pl.when(l == 0)
    def _():
        o_ref[...] = jnp.zeros_like(o_ref)

    x = x_ref[...]                                      # (TN, C, TL), native dtype
    tgt = t_ref[...].astype(jnp.int32)                  # (TB, 1, TL)
    num_classes = x.shape[1]

    # max + one-hot select stay in the input dtype (saves VALU work for bf16 on
    # v6e/v7x; on v5e Mosaic widens internally — still correct); exp / log /
    # accumulation run in f32.
    m = jnp.max(x, axis=1, keepdims=True)                                   # (TN,1,TL)
    cls = jax.lax.broadcasted_iota(jnp.int32, x.shape, 1)                   # (TN,C,TL)
    sel = jnp.sum(jnp.where(cls == tgt, x, jnp.zeros((), x.dtype)),
                  axis=1, keepdims=True)                                    # (TN,1,TL)

    shifted = (x - m).astype(jnp.float32)
    lse_rel = jnp.log(jnp.sum(jnp.exp(shifted), axis=1, keepdims=True))     # (TN,1,TL)
    logp = (sel - m).astype(jnp.float32) - lse_rel                          # (TN,1,TL)

    # Valid pixels only.  Must remain a select (jnp.where), NOT a multiply-mask:
    # the ragged tail of the last logits block holds uninitialized lanes that
    # may be inf/NaN, and 0 * inf would poison the accumulator.
    valid = jnp.logical_and(tgt >= 0, tgt < num_classes)
    o_ref[...] += jnp.where(valid, logp, 0.0)


# --------------------------------------------------------------------------- #
# Tile selection
# --------------------------------------------------------------------------- #
def _round_up(x, m):
    return (x + m - 1) // m * m


def _sublane_tile(dtype):
    # Native sublane tiling of the second-minor dim: 8 for 4-byte, 16 for
    # 2-byte, 32 for 1-byte dtypes.
    return 32 // jnp.dtype(dtype).itemsize


_VMEM_BUDGET = 20 << 20        # tile-sizing budget (well under every gen's VMEM)
_VMEM_LIMIT = 40 << 20         # scoped limit for Mosaic (< v7x's 64 MiB physical)
_MAX_LANE_BLOCKS = 16          # 2048 lanes; gains taper beyond this
_MAX_TN = 32                   # leading block dim; not sublane-bound


def _pick_tiles(N, B, C, L, x_dtype, t_dtype):
    """Jointly pick (TN sample-rows, TB target-rows, TL lanes) per grid step."""
    if B == 1:
        divs = [d for d in range(1, min(_MAX_TN, N) + 1) if N % d == 0]
    else:
        # TN must divide B so the un-broadcast target block lines up.
        # (A prime B > 32 degenerates to TN = 1 — more grid steps, still correct.)
        divs = [d for d in range(1, min(_MAX_TN, B) + 1) if B % d == 0]

    x_row = _round_up(C, _sublane_tile(x_dtype)) * jnp.dtype(x_dtype).itemsize
    t_row = _sublane_tile(t_dtype) * jnp.dtype(t_dtype).itemsize
    lane_cap = min(_MAX_LANE_BLOCKS, _round_up(L, 128) // 128)

    def lane_blocks(tn):
        tb = 1 if B == 1 else tn
        # bytes per 128-lane column: double-buffered logits + target, f32 output
        per_block = 128 * 2 * (tn * x_row + tb * t_row + tn * 8 * 4)
        return max(1, min(lane_cap, _VMEM_BUDGET // per_block))

    def score(tn):
        # 1) lane tile of at least 1024 (8 blocks) — the dominant roofline lever
        # 2) an even number of parallel grid steps (v7x has 2 TensorCores)
        # 3) larger TN (fewer ~0.35us grid steps, denser accumulator writes)
        return (min(lane_blocks(tn), min(8, lane_cap)),
                (N // tn) % 2 == 0,
                tn)

    tn = max(divs, key=score)
    tb = 1 if B == 1 else tn
    tl = 128 * lane_blocks(tn)
    return tn, tb, tl


# --------------------------------------------------------------------------- #
# Wrapper
# --------------------------------------------------------------------------- #
def _per_sample_logprob(logits_ncl, target_bl, S, B):
    """logits_ncl: (N=S*B, C, L) float; target_bl: (B, L) ints -> (N,) f32
    per-sample sums over pixels of log p(target | logits)."""
    N, C, L = logits_ncl.shape
    assert N == S * B

    t_dtype = jnp.int8 if C <= 127 else jnp.int32
    tn, tb, tl = _pick_tiles(N, B, C, L, logits_ncl.dtype, t_dtype)

    n_l = pl.cdiv(L, tl)
    grid = (N // tn, n_l)

    # Only the tiny target is padded (with -1) to the grid's lane extent so the
    # ragged tail of the last *logits* block is masked in-kernel.  The big
    # logits tensor is never padded or copied in HBM.
    lp = n_l * tl
    t = target_bl.astype(t_dtype).reshape(B, 1, L)
    if lp != L:
        t = jnp.pad(t, ((0, 0), (0, 0), (0, lp - L)), constant_values=-1)

    if B == 1:
        t_block = (1, 1, tl)
        t_index_map = lambda nb, l: (0, 0, l)           # broadcast in-kernel
    else:
        b_blocks = B // tn
        t_block = (tn, 1, tl)
        t_index_map = lambda nb, l: (nb % b_blocks, 0, l)   # reuse target across S

    out = pl.pallas_call(
        _ssn_ce_kernel,
        out_shape=jax.ShapeDtypeStruct((N, 1, tl), jnp.float32),
        grid=grid,
        in_specs=[
            # logits: block over (sample-rows, full C, lane tile); ragged last
            # lane block is allowed (cdiv grid) and masked in-kernel
            pl.BlockSpec((tn, C, tl), lambda nb, l: (nb, 0, l)),
            pl.BlockSpec(t_block, t_index_map),
        ],
        # constant along the lane (reduction) axis -> resident accumulator
        out_specs=pl.BlockSpec((tn, 1, tl), lambda nb, l: (nb, 0, 0)),
        compiler_params=pltpu.CompilerParams(
            dimension_semantics=("parallel", "arbitrary"),
            vmem_limit_bytes=_VMEM_LIMIT),
    )(logits_ncl, t)

    # single cross-lane reduction, done once in JAX on the small lane-partials
    return out[:, 0, :].sum(axis=-1)


def ssn_mc_integral_loss(logit_sample, target, num_mc_samples):
    """logit_sample: (S, B, C, H, W) float, i.e. distribution.rsample((S,));
    target: (B, H, W) integer class indices (negative labels are ignored)."""
    S, B, C, H, W = logit_sample.shape
    assert S == num_mc_samples and C >= 2
    L = H * W
    N = S * B

    x = logit_sample.reshape(N, C, L)       # no pad / no extra HBM pass
    t = target.reshape(B, L)
    logp = _per_sample_logprob(x, t, S, B).reshape(S, B)

    loglikelihood = jnp.mean(
        jax.scipy.special.logsumexp(logp, axis=0) - math.log(S))
    return -loglikelihood


# --------------------------------------------------------------------------- #
# Reference + self-test
# --------------------------------------------------------------------------- #
def _reference_loss(logit_sample, target, num_mc_samples):
    S, B, C, H, W = logit_sample.shape
    x = logit_sample.astype(jnp.float32).reshape(S * B, C, H * W)
    t = jnp.broadcast_to(target[None], (S, B, H, W)).reshape(S * B, H * W)
    logsm = jax.nn.log_softmax(x, axis=1)
    sel = jnp.take_along_axis(logsm, t[:, None, :].astype(jnp.int32), axis=1)[:, 0, :]
    logp = sel.reshape(S, B, -1).sum(-1)
    ll = jnp.mean(jax.scipy.special.logsumexp(logp, axis=0) - math.log(num_mc_samples))
    return -ll


def _run_case(key, S, B, C, H, W):
    k_mu, k_noise, k_tgt = jax.random.split(key, 3)
    # TODO(synk): distribution.rsample has no in-kernel equivalent; simulate it
    # deterministically in plain JAX as mean + 0.5 * Gaussian noise.
    mu = jax.random.normal(k_mu, (B, C, H, W), dtype=jnp.float32)
    noise = jax.random.normal(k_noise, (S, B, C, H, W), dtype=jnp.float32)
    logit_sample = mu[None] + 0.5 * noise
    target = jax.random.randint(k_tgt, (B, H, W), 0, C, dtype=jnp.int32)

    loss = jax.block_until_ready(ssn_mc_integral_loss(logit_sample, target, S))
    ref = _reference_loss(logit_sample, target, S)
    assert jnp.allclose(loss, ref, rtol=1e-5, atol=1e-4), (S, B, C, H, W, loss, ref)


if __name__ == "__main__":
    key = jax.random.PRNGKey(0)
    k1, k2 = jax.random.split(key)
    # Small shapes consistent with the module's forward:
    # logits (B, C, H, W) NCHW, target (B, H, W) class indices, S MC samples.
    _run_case(k1, S=4, B=2, C=4, H=16, W=16)
    # Ragged case: H*W not a multiple of 128 and an odd batch — exercises the
    # cdiv lane grid, the -1 target padding and the in-kernel tail mask.
    _run_case(k2, S=2, B=3, C=3, H=13, W=13)
    print("KERNEL_OK")
</pallas_src>

<mosaic_0001>
module attributes {stable_mosaic.version = 11 : i64} {
  func.func @_ssn_ce_kernel(%arg0: i32, %arg1: i32, %arg2: memref<2x4x256xf32, #tpu.memory_space<vmem>>, %arg3: memref<2x1x256xi8, #tpu.memory_space<vmem>>, %arg4: memref<2x1x256xf32, #tpu.memory_space<vmem>>) attributes {dimension_semantics = [#tpu.dimension_semantics<parallel>, #tpu.dimension_semantics<arbitrary>], iteration_bounds = array<i64: 4, 1>, scalar_prefetch = 0 : i64, scratch_operands = 0 : i64, tpu.core_type = #tpu.core_type<tc>, window_params = [{transform_indices = @transform_0, window_bounds = array<i64: 2, 4, 256>}, {transform_indices = @transform_1, window_bounds = array<i64: 2, 1, 256>}, {transform_indices = @transform_2, window_bounds = array<i64: 2, 1, 256>}]} {
    %c0_i32 = arith.constant 0 : i32
    %0 = arith.cmpi eq, %arg1, %c0_i32 : i32
    %1 = arith.extui %0 : i1 to i32
    %c0_i32_0 = arith.constant 0 : i32
    %2 = arith.cmpi ne, %1, %c0_i32_0 : i32
    scf.if %2 {
      %cst_17 = arith.constant 0.000000e+00 : f32
      %33 = vector.broadcast %cst_17 : f32 to vector<2x1x256xf32>
      %c0_18 = arith.constant 0 : index
      %c0_19 = arith.constant 0 : index
      %c0_20 = arith.constant 0 : index
      %34 = vector.load %arg4[%c0_18, %c0_19, %c0_20] : memref<2x1x256xf32, #tpu.memory_space<vmem>>, vector<2x1x256xf32>
      tpu.vector_store %arg4[%c0_18, %c0_19, %c0_20], %33 {strides = array<i32>} : memref<2x1x256xf32, #tpu.memory_space<vmem>>, vector<2x1x256xf32>,
    } else {
    }
    %c0 = arith.constant 0 : index
    %c0_1 = arith.constant 0 : index
    %c0_2 = arith.constant 0 : index
    %3 = vector.load %arg2[%c0, %c0_1, %c0_2] : memref<2x4x256xf32, #tpu.memory_space<vmem>>, vector<2x4x256xf32>
    %c0_3 = arith.constant 0 : index
    %c0_4 = arith.constant 0 : index
    %c0_5 = arith.constant 0 : index
    %4 = vector.load %arg3[%c0_3, %c0_4, %c0_5] : memref<2x1x256xi8, #tpu.memory_space<vmem>>, vector<2x1x256xi8>
    %5 = arith.extsi %4 : vector<2x1x256xi8> to vector<2x1x256xi32>
    %cst = arith.constant dense<0xFF800000> : vector<2x256xf32>
    %6 = vector.multi_reduction <maximumf>, %3, %cst [1] : vector<2x4x256xf32> to vector<2x256xf32>
    %7 = vector.shape_cast %6 : vector<2x256xf32> to vector<2x1x256xf32>
    %8 = tpu.iota {dimensions = array<i32: 1>} : vector<2x4x256xi32>
    %9 = vector.broadcast %5 : vector<2x1x256xi32> to vector<2x4x256xi32>
    %10 = arith.cmpi eq, %8, %9 : vector<2x4x256xi32>
    %cst_6 = arith.constant 0.000000e+00 : f32
    %11 = vector.broadcast %cst_6 : f32 to vector<2x4x256xf32>
    %12 = arith.select %10, %3, %11 : vector<2x4x256xi1>, vector<2x4x256xf32>
    %cst_7 = arith.constant dense<0.000000e+00> : vector<2x256xf32>
    %13 = vector.multi_reduction <add>, %12, %cst_7 [1] : vector<2x4x256xf32> to vector<2x256xf32>
    %14 = vector.shape_cast %13 : vector<2x256xf32> to vector<2x1x256xf32>
    %15 = vector.broadcast %7 : vector<2x1x256xf32> to vector<2x4x256xf32>
    %16 = arith.subf %3, %15 : vector<2x4x256xf32>
    %17 = math.exp %16 : vector<2x4x256xf32>
    %cst_8 = arith.constant dense<0.000000e+00> : vector<2x256xf32>
    %18 = vector.multi_reduction <add>, %17, %cst_8 [1] : vector<2x4x256xf32> to vector<2x256xf32>
    %19 = vector.shape_cast %18 : vector<2x256xf32> to vector<2x1x256xf32>
    %20 = math.log %19 : vector<2x1x256xf32>
    %21 = arith.subf %14, %7 : vector<2x1x256xf32>
    %22 = arith.subf %21, %20 : vector<2x1x256xf32>
    %c0_i32_9 = arith.constant 0 : i32
    %23 = vector.broadcast %c0_i32_9 : i32 to vector<2x1x256xi32>
    %24 = arith.cmpi sge, %5, %23 : vector<2x1x256xi32>
    %c4_i32 = arith.constant 4 : i32
    %25 = vector.broadcast %c4_i32 : i32 to vector<2x1x256xi32>
    %26 = arith.cmpi slt, %5, %25 : vector<2x1x256xi32>
    %27 = arith.andi %24, %26 : vector<2x1x256xi1>
    %c0_10 = arith.constant 0 : index
    %c0_11 = arith.constant 0 : index
    %c0_12 = arith.constant 0 : index
    %28 = vector.load %arg4[%c0_10, %c0_11, %c0_12] : memref<2x1x256xf32, #tpu.memory_space<vmem>>, vector<2x1x256xf32>
    %cst_13 = arith.constant 0.000000e+00 : f32
    %29 = vector.broadcast %cst_13 : f32 to vector<2x1x256xf32>
    %30 = arith.select %27, %22, %29 : vector<2x1x256xi1>, vector<2x1x256xf32>
    %31 = arith.addf %28, %30 : vector<2x1x256xf32>
    %c0_14 = arith.constant 0 : index
    %c0_15 = arith.constant 0 : index
    %c0_16 = arith.constant 0 : index
    %32 = vector.load %arg4[%c0_14, %c0_15, %c0_16] : memref<2x1x256xf32, #tpu.memory_space<vmem>>, vector<2x1x256xf32>
    tpu.vector_store %arg4[%c0_14, %c0_15, %c0_16], %31 {strides = array<i32>} : memref<2x1x256xf32, #tpu.memory_space<vmem>>, vector<2x1x256xf32>,
    return
  }
  func.func @transform_0(%arg0: i32, %arg1: i32) -> (i32, i32, i32) {
    %c0_i32 = arith.constant 0 : i32
    %c0_i32_0 = arith.constant 0 : i32
    return %arg0, %c0_i32, %arg1 : i32, i32, i32
  }
  func.func @transform_1(%arg0: i32, %arg1: i32) -> (i32, i32, i32) {
    %c1_i32 = arith.constant 1 : i32
    %c0_i32 = arith.constant 0 : i32
    %0 = arith.cmpi eq, %c1_i32, %c0_i32 : i32
    %c1_i32_0 = arith.constant 1 : i32
    %1 = arith.select %0, %c1_i32_0, %c1_i32 : i32
    %2 = arith.remsi %arg0, %1 : i32
    %c0_i32_1 = arith.constant 0 : i32
    %3 = arith.cmpi ne, %2, %c0_i32_1 : i32
    %c0_i32_2 = arith.constant 0 : i32
    %4 = arith.cmpi slt, %2, %c0_i32_2 : i32
    %c0_i32_3 = arith.constant 0 : i32
    %5 = arith.cmpi slt, %1, %c0_i32_3 : i32
    %6 = arith.xori %4, %5 : i1
    %7 = arith.andi %6, %3 : i1
    %8 = arith.addi %2, %1 : i32
    %9 = arith.select %7, %8, %2 : i32
    %c0_i32_4 = arith.constant 0 : i32
    %c0_i32_5 = arith.constant 0 : i32
    return %9, %c0_i32_4, %arg1 : i32, i32, i32
  }
  func.func @transform_2(%arg0: i32, %arg1: i32) -> (i32, i32, i32) {
    %c0_i32 = arith.constant 0 : i32
    %c0_i32_0 = arith.constant 0 : i32
    %c0_i32_1 = arith.constant 0 : i32
    return %arg0, %c0_i32, %c0_i32_0 : i32, i32, i32
  }
}

</mosaic_0001>

<bundles_post_ra>
// kernel: tpu_custom_call.1
= control target key start
LH: loop header
LB: loop body
LE: loop exit
PB: predicated region body
PF: predicated region fallthrough
CT: control target
= control target key end

     0   :  { %7 = vsyncpa [#allocation3], 0  ;;  %s971_s0 = inlined_call_operand.hbm [shape: f32[8,4,256], index: 0, kind: input, shape index: {}]   ;;  %s972_s1 = inlined_call_operand.vmem [shape: s8[2,1,256], index: 1, kind: input, shape index: {}]   ;;  %s973_s2 = inlined_call_operand.hbm [shape: f32[8,1,256], index: 2, kind: output, shape index: {}]  }
   0x1   :  { %9 = vsyncpa [#allocation3 + $0x1], 0 }
   0x2   :  { %10 = vsyncpa [#allocation4], 0 }
   0x3   :  { %12 = vsyncpa [#allocation4 + $0x1], 0  ;;  %s777_s9 = smov 0   ;;  %s779_s10 = smov 0  }
   0x4   :  { %s781_s11 = smov 0   ;;  %s783_s12 = smov 0  }
   0x5   :  { %s785_s13 = smov 0   ;;  %s787_s14 = smov 0  }
   0x6 LB: > { %s540_s15 = sadd.s32 4294967295, %s755_s14   ;;  %s541_s16 = sadd.s32 4294967294, %s755_s14   ;;  %s755_s14 = sphi %s787_s14, %s18_s14   ;;  %s751_s13 = sphi %s785_s13, %s984_s13   ;;  %s747_s12 = sphi %s783_s12, %s983_s12   ;;  %s743_s11 = sphi %s781_s11, %s982_s11   ;;  %s739_s10 = sphi %s779_s10, %s981_s10   ;;  %s735_s9 = sphi %s777_s9, %s980_s9  }
   0x7   : > { %s30_s17 = sadd.s32 1, %s751_s13  ;;  %s39_s18 = sadd.s32 1, %s743_s11 }
   0x8   : > { %p32_p0 = scmp.ge.s32.totalorder %s30_s17, 4  ;;  %p46_p1 = scmp.ne.s32.totalorder %s743_s11, %s739_s10 }
   0x9   : > { %p47_p2 = scmp.eq.s32.totalorder %s755_s14, 0  ;;  %p52_p3 = scmp.ne.s32.totalorder %s739_s10, %s735_s9 }
   0xa   : > { %s986_s17 = smov (%p32_p0, %s30_s17), 0  ;;  %p53_p5 = scmp.eq.s32.totalorder %s540_s15, 0 }
   0xb   : > { %p818_p4 = por %p47_p2, %p46_p1  ;;  %s34_s20 = ssub.s32 %s751_s13, %s986_s17 }
   0xc   : > { %p102_p6 = scmp.eq.s32.totalorder %s540_s15, 3  ;;  %p37_p7 = scmp.eq.s32.totalorder %s34_s20, 0 }
   0xd   : > { %p824_p8 = por %p53_p5, %p52_p3  ;;  %p108_p10 = scmp.eq.s32.totalorder %s541_s16, 3 }
   0xe   : > { %p828_p9 = por %p102_p6, %p46_p1  ;;  %p576_p12 = scmp.lt.s32.totalorder %s755_s14, 4 }
   0xf   : > { %s833_s23 = scalar_select %p37_p7, %s743_s11, %s39_s18  }
  0x10   : > { %p835_p11 = por %p108_p10, %p52_p3  ;;  %s136_s25 = sand.u32 1, %s743_s11  }
  0x11   : > { %s545_s26 = sshll.u32 %s136_s25, 4  ;;  %s558_s27 = sshll.u32 %s751_s13, 4 }
  0x12   : > { %s148_s30 = scalar_lea.hbm %s971_s0, %s558_s27  ;;  %s140_s3 = scalar_lea.vmem [#allocation2], %s545_s26 }
  0x13   : > { %s151_s4 = sshll.u32 %s140_s3, 4  ;;  %s149_s5 = sshll.u32 %s148_s30, 4  ;;  %s152_s4 = int_to_ptr.vmem [resolvable:$true] %s151_s4  ;;  %s150_s5 = int_to_ptr.hbm [resolvable:$true] %s149_s5 }
  0x14   : > { %p569_p13 = pnand %p576_p12, %p818_p4  ;;  %p549_p0 = scmp.ge.s32.totalorder %s755_s14, 1 }
  0x15   : > { %s137_s6 = scalar_lea.sflag [#allocation3], %s136_s25  ;;  %s757_s7 = smov 128  }
  0x16   : > { %s758_s8 = smov 8   ;;  %p159_p1 = scmp.lt.s32.totalorder %s755_s14, 5 }
  0x17   : > { %571 = dma.hbm_to_vmem [thread:$0]  (!%p569_p13), %s150_s5, 256, %s152_s4, %s137_s6, %s757_s7, %s757_s7, %s758_s8  }
  0x18   : > { %p160_p2 = pnand %p549_p0, %p159_p1 }
  0x19   : > { %s850_s15 = sand.u32 (!%p160_p2), 1, %s739_s10  }
  0x1a   : > { %163 = sbr.rel (%p160_p2) target bundleno = 117 (0x75), region = 28  ;;  %s550_s16 = sshll.u32 (!%p160_p2), %s850_s15, 4 }
  0x1b   : > { %s166_s18 = scalar_lea.sflag (!%p160_p2), [#allocation3], %s850_s15  ;;  %s169_s20 = scalar_lea.vmem (!%p160_p2), [#allocation2], %s550_s16 }
  0x1f   : > { %726 = dma.done.wait (%p824_p8), %s166_s18, 256  }
  0x20   : > { %728 = vsyncadd (%p824_p8), %s166_s18, 4294967040  ;;  %v213_v0 = vld [vmem:[%s169_s20] sm:$0xff]  ;;  %v858_v1 = vld [vmem:[%s169_s20 + $0x8] sm:$0xff]  ;;  %s551_s19 = sshll.u32 %s850_s15, 2  ;;  %v207_v2 = vlaneseq  ;;  %vm232_vm0 = vcmask 1043456   ;;  %v759_v13 = vmov 0.0  }
  0x21   : > { %221 = vst [vmem:[#allocation1] ss:$2 sm:$0xff] %v213_v0  ;;  %s869_s21 = scalar_lea.vmem [#allocation5], %s551_s19  ;;  %v561_v27 = vld [vmem:[%s972_s1] sm:$0xf]   ;;  %s559_s27 = sshll.u32 %s747_s12, 2 }
  0x22   : > { %225 = vst [vmem:[#allocation1 + $0x10] ss:$2 sm:$0xff] %v858_v1  ;;  %vm862_vm1 = vcmp.lt.s32.totalorder %v207_v2, 256  ;;  %v884_v33 = vunpack.c.0.s8 %v561_v27  ;;  %v891_v39 = vunpack.c.1.s8 %v561_v27  ;;  %v262_v50 = vshrl.u32 %v207_v2, 7  ;;  %s440_s30 = scalar_lea.hbm %s973_s2, %s559_s27  ;;  %s441_s12 = sshll.u32 %s869_s21, 4  ;;  %s442_s12 = int_to_ptr.vmem [resolvable:$true] %s441_s12 }
  0x23   : > { %211 = vst.msk [vmem:[%s869_s21] sm:$0x3] %vm862_vm1, %v759_v13  ;;  %vm415_vm11 = vcmask 1040384   ;;  %s443_s3 = sshll.u32 %s440_s30, 4  ;;  %s429_s4 = scalar_lea.sflag [#allocation4], %s850_s15  ;;  %s444_s3 = int_to_ptr.hbm [resolvable:$true] %s443_s3 }
  0x24   : > { %212 = vst.msk [vmem:[%s869_s21 + $0x2] sm:$0x3] %vm862_vm1, %v759_v13  ;;  %v264_v41 = vperm.slane %v884_v33, 4  ;;  %v263_v45 = vperm.slane %v884_v33, 0  ;;  %v266_v48 = vperm.slane %v891_v39, 4  ;;  %v265_v51 = vperm.slane %v891_v39, 0 }
  0x25   : > { %vm391_vm6 = vcmp.ge.s32.totalorder %v884_v33, 0  ;;  %vm393_vm7 = vcmp.lt.s32.totalorder %v884_v33, 4  ;;  %vm392_vm9 = vcmp.ge.s32.totalorder %v891_v39, 0  ;;  %vm394_vm10 = vcmp.lt.s32.totalorder %v891_v39, 4  ;;  %s687_s5 = sshra.s32 %s444_s3, 4  ;;  %s693_s16 = scalar_lea.hbm %s973_s2, 16  ;;  %s688_s5 = int_to_ptr.hbm [resolvable:$true] %s687_s5 }
  0x26   : > { %v268_v52 = vperm.slane %v264_v41, 0  ;;  %v267_v53 = vperm.slane %v263_v45, 0  ;;  %v270_v55 = vperm.slane %v266_v48, 0  ;;  %v269_v57 = vperm.slane %v265_v51, 0  ;;  %vm395_vm8 = vmand %vm391_vm6, %vm393_vm7  ;;  %s689_s6 = scalar_lea.hbm %s688_s5, 4  ;;  %p694_p6 = scmp.lt.s32.totalorder %s688_s5, %s973_s2 }
  0x27   : > { %vm396_vm12 = vmand %vm392_vm9, %vm394_vm10  ;;  %p690_p3 = scmp.ne.s32.totalorder %s688_s5, %s689_s6  ;;  %p695_p7 = scmp.lt.s32.totalorder %s693_s16, %s689_s6 }
  0x28   : > { %v222_v4 = vld.sshfl [vmem:[#allocation1] sm:$0xff pattern:$0x75316420]  ;;  %v223_v5 = vld.sshfl [vmem:[#allocation1 + $0x8] sm:$0xff pattern:$0x75316420]  ;;  %vm272_vm2 = vcmp.eq.s32.totalorder %v262_v50, %v268_v52  ;;  %vm271_vm3 = vcmp.eq.s32.totalorder %v262_v50, %v267_v53  ;;  %vm274_vm4 = vcmp.eq.s32.totalorder %v262_v50, %v270_v55  ;;  %vm273_vm5 = vcmp.eq.s32.totalorder %v262_v50, %v269_v57 }
  0x29   : > { %v233_v6 = vsel %vm232_vm0, %v222_v4, -inf  ;;  %v240_v7 = vsel %vm232_vm0, %v223_v5, -inf  ;;  %275 = vst [vmem:[#allocation1] ss:$2 sm:$0xff] %v213_v0  ;;  %p691_p4 = pnand %p690_p3, %p828_p9  ;;  %p696_p8 = por %p695_p7, %p694_p6 }
  0x2a   : > { %v234_v8 = vrot.slane %v233_v6, 4  ;;  %v241_v9 = vrot.slane %v240_v7, 4  ;;  %v226_v10 = vld.sshfl [vmem:[#allocation1 + $0x10] sm:$0xff pattern:$0x75316420] }
  0x2b   : > { %v227_v11 = vld.sshfl [vmem:[#allocation1 + $0x18] sm:$0xff pattern:$0x75316420]  ;;  %v247_v12 = vsel %vm232_vm0, %v226_v10, -inf  ;;  %v397_v39 = vld [vmem:[%s869_s21] sm:$0x3]  ;;  %p692_p5 = pneg %p691_p4 }
  0x2c   : > { %v235_v14 = vmax.f32 %v233_v6, %v234_v8  ;;  %v242_v15 = vmax.f32 %v240_v7, %v241_v9  ;;  %v248_v16 = vrot.slane %v247_v12, 4  ;;  %v254_v17 = vsel %vm232_vm0, %v227_v11, -inf  ;;  %279 = vst [vmem:[#allocation1 + $0x10] ss:$2 sm:$0xff] %v858_v1 }
  0x2d   : > { %v255_v18 = vrot.slane %v254_v17, 4  ;;  %p697_p10 = pnand %p696_p8, %p692_p5 }
  0x2e   : > { %v236_v19 = vrot.slane %v235_v14, 2  ;;  %v243_v20 = vrot.slane %v242_v15, 2  ;;  %v249_v21 = vmax.f32 %v247_v12, %v248_v16 }
  0x2f   : > { %v256_v22 = vmax.f32 %v254_v17, %v255_v18 }
  0x30   : > { %v237_v23 = vmax.f32 %v235_v14, %v236_v19  ;;  %v244_v24 = vmax.f32 %v242_v15, %v243_v20  ;;  %v250_v25 = vrot.slane %v249_v21, 2  ;;  %v277_v56 = vld.sshfl [vmem:[#allocation1 + $0x8] sm:$0xff pattern:$0x75316420] }
  0x31   : > { %v257_v26 = vrot.slane %v256_v22, 2  ;;  %v276_v58 = vld.sshfl [vmem:[#allocation1] sm:$0xff pattern:$0x75316420]  ;;  %v287_v61 = vsel %vm272_vm2, %v277_v56, 0.0 }
  0x32   : > { %v238_v28 = vrot.slane %v237_v23, 1  ;;  %v245_v29 = vrot.slane %v244_v24, 1  ;;  %v251_v30 = vmax.f32 %v249_v21, %v250_v25  ;;  %v286_v63 = vsel %vm271_vm3, %v276_v58, 0.0 }
  0x33   : > { %v258_v31 = vmax.f32 %v256_v22, %v257_v26  ;;  %v281_v60 = vld.sshfl [vmem:[#allocation1 + $0x18] sm:$0xff pattern:$0x75316420]  ;;  %v280_v62 = vld.sshfl [vmem:[#allocation1 + $0x10] sm:$0xff pattern:$0x75316420] }
  0x34   : > { %v882_v32 = vmax.f32 %v244_v24, %v245_v29  ;;  %v252_v34 = vrot.slane %v251_v30, 1  ;;  %v886_v36 = vmax.f32 %v237_v23, %v238_v28  ;;  %v297_v2 = vsel %vm232_vm0, %v287_v61, 0.0 }
  0x35   : > { %v259_v35 = vrot.slane %v258_v31, 1  ;;  %v288_v4 = vsel %vm273_vm5, %v280_v62, 0.0  ;;  %v290_v5 = vsel %vm232_vm0, %v286_v63, 0.0  ;;  %v298_v6 = vrot.slane %v297_v2, 4 }
  0x36   : > { %v322_v37 = vrot.slane %v882_v32, 4  ;;  %v896_v43 = vmax.f32 %v251_v30, %v252_v34  ;;  %v291_v8 = vrot.slane %v290_v5, 4  ;;  %v304_v9 = vsel %vm232_vm0, %v288_v4, 0.0 }
  0x37   : > { %v889_v38 = vmax.f32 %v258_v31, %v259_v35  ;;  %v299_v15 = vadd.f32 %v298_v6, %v297_v2  ;;  %v305_v16 = vrot.slane %v304_v9, 4 }
  0x38   : > { %v324_v40 = vsel %vm232_vm0, %v886_v36, %v322_v37  ;;  %v292_v19 = vadd.f32 %v291_v8, %v290_v5 }
  0x39   : > { %v328_v42 = vsub.f32 %v213_v0, %v324_v40  ;;  %v323_v44 = vrot.slane %v889_v38, 4  ;;  %v300_v29 = vrot.slane %v299_v15, 2  ;;  %v306_v34 = vadd.f32 %v305_v16, %v304_v9 }
  0x3a   : > { %v293_v40 = vrot.slane %v292_v19, 2 }
  0x3b   : > { %v330_v46 = vmul.f32 1.442695, %v328_v42  ;;  %v325_v47 = vsel %vm232_vm0, %v896_v43, %v323_v44  ;;  %v307_v50 = vrot.slane %v306_v34, 2 }
  0x3c   : > { %v329_v49 = vsub.f32 %v858_v1, %v325_v47  ;;  %v289_v1 = vsel %vm274_vm4, %v281_v60, 0.0  ;;  %v301_v47 = vadd.f32 %v300_v29, %v299_v15  ;;  %v294_v53 = vadd.f32 %v293_v40, %v292_v19 }
  0x3d   : > { %631 = vpow2.f32 %v330_v46  ;;  %v311_v7 = vsel %vm232_vm0, %v289_v1, 0.0  ;;  %v308_v60 = vadd.f32 %v307_v50, %v306_v34 }
  0x3e   : > { %v332_v54 = vmul.f32 1.442695, %v329_v49  ;;  %v312_v12 = vrot.slane %v311_v7, 4  ;;  %v295_v63 = vrot.slane %v294_v53, 1 }
  0x3f   : > { %v309_v2 = vrot.slane %v308_v60, 1 }
  0x40   : > { %633 = vpow2.f32 %v332_v54  ;;  %v313_v26 = vadd.f32 %v312_v12, %v311_v7  ;;  %v296_v5 = vadd.f32 %v295_v63, %v294_v53 }
  0x41   : > { %v310_v12 = vadd.f32 %v309_v2, %v308_v60 }
  0x42   : > { %v314_v44 = vrot.slane %v313_v26, 2 }
  0x43   : > { %v632_v59 = vpop.eup %631 }
  0x44   : > { %336 = vst [vmem:[#allocation1] ss:$2 sm:$0xff] %v632_v59  ;;  %v315_v56 = vadd.f32 %v314_v44, %v313_v26  ;;  %v302_v59 = vrot.slane %v301_v47, 1 }
  0x46   : > { %v634_v0 = vpop.eup %633  ;;  %v303_v1 = vadd.f32 %v302_v59, %v301_v47 }
  0x47   : > { %340 = vst [vmem:[#allocation1 + $0x10] ss:$2 sm:$0xff] %v634_v0  ;;  %v316_v0 = vrot.slane %v315_v56, 1 }
  0x49   : > { %v317_v7 = vadd.f32 %v316_v0, %v315_v56 }
  0x4b   : > { %v337_v10 = vld.sshfl [vmem:[#allocation1] sm:$0xff pattern:$0x75316420]  ;;  %v338_v11 = vld.sshfl [vmem:[#allocation1 + $0x8] sm:$0xff pattern:$0x75316420] }
  0x4c   : > { %v347_v13 = vsel %vm232_vm0, %v337_v10, 0.0  ;;  %v354_v14 = vsel %vm232_vm0, %v338_v11, 0.0  ;;  %v384_v10 = vsub.f32 %v303_v1, %v882_v32  ;;  %v385_v32 = vsub.f32 %v310_v12, %v896_v43 }
  0x4d   : > { %v348_v17 = vrot.slane %v347_v13, 4  ;;  %v355_v18 = vrot.slane %v354_v14, 4 }
  0x4e   : > { %v341_v20 = vld.sshfl [vmem:[#allocation1 + $0x10] sm:$0xff pattern:$0x75316420]  ;;  %v342_v21 = vld.sshfl [vmem:[#allocation1 + $0x18] sm:$0xff pattern:$0x75316420] }
  0x4f   : > { %v349_v22 = vadd.f32 %v348_v17, %v347_v13  ;;  %v356_v23 = vadd.f32 %v355_v18, %v354_v14  ;;  %v361_v24 = vsel %vm232_vm0, %v341_v20, 0.0  ;;  %v368_v25 = vsel %vm232_vm0, %v342_v21, 0.0 }
  0x50   : > { %v362_v27 = vrot.slane %v361_v24, 4  ;;  %v369_v28 = vrot.slane %v368_v25, 4  ;;  %v383_v14 = vsub.f32 %v296_v5, %v886_v36  ;;  %v386_v18 = vsub.f32 %v317_v7, %v889_v38 }
  0x51   : > { %v350_v30 = vrot.slane %v349_v22, 2  ;;  %v357_v31 = vrot.slane %v356_v23, 2 }
  0x52   : > { %v363_v35 = vadd.f32 %v362_v27, %v361_v24  ;;  %v370_v37 = vadd.f32 %v369_v28, %v368_v25  ;;  %v398_v27 = vld [vmem:[%s869_s21 + $0x2] sm:$0x3] }
  0x53   : > { %v351_v41 = vadd.f32 %v350_v30, %v349_v22  ;;  %v358_v42 = vadd.f32 %v357_v31, %v356_v23 }
  0x54   : > { %v364_v45 = vrot.slane %v363_v35, 2  ;;  %v371_v46 = vrot.slane %v370_v37, 2 }
  0x55   : > { %v352_v48 = vrot.slane %v351_v41, 1  ;;  %v359_v49 = vrot.slane %v358_v42, 1 }
  0x56   : > { %v365_v51 = vadd.f32 %v364_v45, %v363_v35  ;;  %v372_v52 = vadd.f32 %v371_v46, %v370_v37 }
  0x57   : > { %v353_v54 = vadd.f32 %v352_v48, %v351_v41  ;;  %v360_v55 = vadd.f32 %v359_v49, %v358_v42 }
  0x58   : > { %v366_v57 = vrot.slane %v365_v51, 1  ;;  %v373_v58 = vrot.slane %v372_v52, 1 }
  0x59   : > { %635 = vlog2.f32 %v353_v54 }
  0x5a   : > { %637 = vlog2.f32 %v360_v55  ;;  %v367_v61 = vadd.f32 %v366_v57, %v365_v51  ;;  %v374_v62 = vadd.f32 %v373_v58, %v372_v52 }
  0x5c   : > { %639 = vlog2.f32 %v367_v61 }
  0x5d   : > { %641 = vlog2.f32 %v374_v62 }
  0x5f   : > { %v636_v4 = vpop.eup %635 }
  0x60   : > { %v638_v6 = vpop.eup %637  ;;  %v376_v8 = vmul.f32 0.6931472, %v636_v4 }
  0x61   : > { %v378_v9 = vmul.f32 0.6931472, %v638_v6 }
  0x62   : > { %v640_v11 = vpop.eup %639  ;;  %v387_v19 = vsub.f32 %v383_v14, %v376_v8 }
  0x63   : > { %v642_v13 = vpop.eup %641  ;;  %v388_v15 = vsub.f32 %v384_v10, %v378_v9  ;;  %v380_v16 = vmul.f32 0.6931472, %v640_v11 }
  0x64   : > { %v382_v17 = vmul.f32 0.6931472, %v642_v13 }
  0x65   : > { %v403_v20 = vrot.slane %v388_v15, 4  ;;  %v389_v38 = vsub.f32 %v385_v32, %v380_v16 }
  0x66   : > { %v390_v33 = vsub.f32 %v386_v18, %v382_v17 }
  0x67   : > { %v405_v36 = vsel %vm232_vm0, %v387_v19, %v403_v20 }
  0x68   : > { %v409_v21 = vsel %vm395_vm8, %v405_v36, 0.0  ;;  %v404_v22 = vrot.slane %v390_v33, 4 }
  0x69   : > { %v413_v23 = vrot.slane %v409_v21, 3 }
  0x6a   : > { %v406_v43 = vsel %vm232_vm0, %v389_v38, %v404_v22 }
  0x6b   : > { %v416_v24 = vsel %vm415_vm11, %v409_v21, %v413_v23  ;;  %v410_v25 = vsel %vm396_vm12, %v406_v43, 0.0 }
  0x6c   : > { %v420_v26 = vadd.f32 %v416_v24, %v397_v39  ;;  %v414_v28 = vrot.slane %v410_v25, 3 }
  0x6e   : > { %426 = vst.msk [vmem:[%s869_s21] sm:$0x3] %vm862_vm1, %v420_v26  ;;  %v417_v29 = vsel %vm415_vm11, %v410_v25, %v414_v28 }
  0x6f   : > { %v421_v30 = vadd.f32 %v417_v29, %v398_v27 }
  0x71   : > { %427 = vst.msk [vmem:[%s869_s21 + $0x2] sm:$0x3] %vm862_vm1, %v421_v30 }
  0x72   : > { %700 = shalt.err (!%p697_p10)
}
  0x73   : > { %s760_s15 = smov 32   ;;  %s761_s19 = smov 2  }
  0x74   : > { %566 = dma.vmem_to_hbm [thread:$0]  (%p828_p9), %s442_s12, 64, %s444_s3, %s429_s4, %s760_s15, %s760_s15, %s761_s19  }
  0x75 PF: > { %p577_p12 = scmp.ge.s32.totalorder %s755_s14, 2  ;;  %s458_s21 = sand.u32 1, %s735_s9  }
  0x76   : > { %s459_s25 = scalar_lea.sflag [#allocation4], %s458_s21 }
  0x77   : > { %p573_p13 = pnand %p577_p12, %p835_p11 }
  0x79   : > { %p574_p0 = pneg %p573_p13 }
  0x7b   : > { %730 = dma.done.wait (%p574_p0), %s459_s25, 64  }
  0x7c   : > { %732 = vsyncadd (%p574_p0), %s459_s25, 4294967232  ;;  %s18_s14 = sadd.s32 1, %s755_s14   ;;  %s980_s9 = smov %s739_s10 }
  0x7d   : > { %p15_p1 = scmp.ge.s32.totalorder %s18_s14, 6   ;;  %s981_s10 = smov %s743_s11 }
  0x7e   : > { %s982_s11 = smov %s833_s23  ;;  %s983_s12 = smov %s751_s13 }
  0x7f   : > { %s984_s13 = smov %s986_s17  ;;  %17 = sbr.rel (!%p15_p1) target bundleno = 6 (0x6), region = 83 }
  0x84   :  { %465 = vsyncpa [#allocation3], 1 }
  0x85   :  { %467 = vsyncpa [#allocation3 + $0x1], 1 }
  0x86   :  { %468 = vsyncpa [#allocation4], 1 }
  0x87   :  { %470 = vsyncpa [#allocation4 + $0x1], 1 }

</bundles_post_ra>
